<compile_context>
chip_gen: v7x
topology: tpu7x:2x2x1
jax: 0.10.0
libtpu: 0.0.40
codegen_flags: <defaults>
</compile_context>

<pallas_src>
import functools

import jax
import jax.numpy as jnp
from jax.experimental import pallas as pl
from jax.experimental.pallas import tpu as pltpu


def _lstm_kernel(x_ref, w_ref, b_ref, wlin_ref, blin_ref, out_ref,
                 h_scr, c_scr, xh_scr, *, hidden, in_dim):
    """One grid step = one (batch block, time chunk). Timesteps iterate in-kernel."""
    tc = pl.program_id(1)                      # time-chunk index (innermost axis)

    @pl.when(tc == 0)
    def _():
        h_scr[...] = jnp.zeros_like(h_scr)
        c_scr[...] = jnp.zeros_like(c_scr)

    H = hidden
    D = in_dim
    Tt, Bt, _ = x_ref.shape

    w = w_ref[...]                                        # (D+H, 4H) bf16, loop-invariant
    bias = jnp.broadcast_to(b_ref[...], (Bt, 4 * H))      # hoisted broadcast, f32

    def step(t, carry):
        h, c = carry                                      # f32 (Bt, H)
        # Fused gate matmul: write x_t and h into the persistent xh buffer, one dot.
        xh_scr[:, :D] = x_ref[t]                          # (Bt, D) bf16
        xh_scr[:, D:] = h.astype(jnp.bfloat16)            # (Bt, H) bf16
        gates = jnp.dot(xh_scr[...], w,
                        preferred_element_type=jnp.float32) + bias   # (Bt, 4H) f32

        sig = jax.nn.sigmoid(gates)                       # single EUP pass over (Bt, 4H)
        i = sig[:, 0 * H:1 * H]
        f = sig[:, 1 * H:2 * H]
        o = sig[:, 3 * H:4 * H]
        g = jnp.tanh(gates[:, 2 * H:3 * H])

        c_new = f * c + i * g                             # f32 cell state
        h_new = o * jnp.tanh(c_new)
        return h_new, c_new

    h0 = h_scr[...]
    c0 = c_scr[...]
    unroll = True if Tt <= 32 else 8
    h_T, c_T = jax.lax.fori_loop(0, Tt, step, (h0, c0), unroll=unroll)

    # Spill state only at the chunk boundary.
    h_scr[...] = h_T
    c_scr[...] = c_T

    @pl.when(tc == pl.num_programs(1) - 1)
    def _():
        # out = h_T @ W_lin^T + b_lin   -> (Bt, 1)
        out = (jnp.dot(h_T.astype(jnp.bfloat16), wlin_ref[...],
                       preferred_element_type=jnp.float32)
               + blin_ref[...])
        out_ref[...] = out.astype(out_ref.dtype)


def lstm_linear_forward(x, w_ih, w_hh, b_ih, b_hh, w_lin, b_lin,
                        *, time_block=256, batch_block=None):
    """x: (B, T, D) batch_first, like the PyTorch module. Returns (B, 1) float32."""
    B, T, D = x.shape
    H = w_hh.shape[1]                     # w_hh: (4H, H) PyTorch layout
    assert w_ih.shape == (4 * H, D)

    # Time chunking (amortize grid overhead; chunk must divide T, else one chunk).
    Tt = min(T, time_block)
    if T % Tt != 0:
        Tt = T
    num_chunks = T // Tt

    # Optional batch blocking (v7x: "parallel" axis shards over the 2 TensorCores).
    Bt = B if batch_block is None else batch_block
    assert B % Bt == 0 and (Bt == B or Bt % 8 == 0)
    num_b = B // Bt

    # Parameter prep in plain JAX: bf16 matmul operands, f32 biases.
    x_tm = jnp.transpose(x, (1, 0, 2)).astype(jnp.bfloat16)          # (T, B, D)
    w_cat = jnp.concatenate(
        [jnp.transpose(w_ih), jnp.transpose(w_hh)], axis=0
    ).astype(jnp.bfloat16)                                           # (D+H, 4H)
    b = (b_ih + b_hh).reshape(1, 4 * H).astype(jnp.float32)          # (1, 4H)
    wlin_t = jnp.transpose(w_lin).astype(jnp.bfloat16)               # (H, 1)
    blin = b_lin.reshape(1, 1).astype(jnp.float32)                   # (1, 1)

    kernel = functools.partial(_lstm_kernel, hidden=H, in_dim=D)

    return pl.pallas_call(
        kernel,
        out_shape=jax.ShapeDtypeStruct((B, 1), jnp.float32),
        grid_spec=pltpu.PrefetchScalarGridSpec(
            num_scalar_prefetch=0,
            grid=(num_b, num_chunks),
            in_specs=[
                # x: one (time-chunk, batch-block) tile per grid step (pipelined).
                pl.BlockSpec((Tt, Bt, D), lambda bb, tc: (tc, bb, 0)),
                # Constant weights/biases: whole array resident in VMEM, no
                # double-buffered pipelining (matters for large H on v7x's 64 MiB).
                pl.BlockSpec(memory_space=pltpu.MemorySpace.VMEM),   # w_cat
                pl.BlockSpec(memory_space=pltpu.MemorySpace.VMEM),   # bias
                pl.BlockSpec(memory_space=pltpu.MemorySpace.VMEM),   # w_lin
                pl.BlockSpec(memory_space=pltpu.MemorySpace.VMEM),   # b_lin
            ],
            out_specs=pl.BlockSpec((Bt, 1), lambda bb, tc: (bb, 0)),
            scratch_shapes=[
                pltpu.VMEM((Bt, H), jnp.float32),          # h state (chunk boundary)
                pltpu.VMEM((Bt, H), jnp.float32),          # c state (chunk boundary)
                pltpu.VMEM((Bt, D + H), jnp.bfloat16),     # fused [x_t, h] buffer
            ],
        ),
        compiler_params=pltpu.CompilerParams(
            dimension_semantics=("parallel", "arbitrary"),
            vmem_limit_bytes=64 * 1024 * 1024,
        ),
    )(x_tm, w_cat, b, wlin_t, blin)


def _reference_forward_f32(x, w_ih, w_hh, b_ih, b_hh, w_lin, b_lin):
    """Pure-JAX f32 reference matching PyTorch nn.LSTM + nn.Linear semantics."""
    B, T, D = x.shape
    H = w_hh.shape[1]

    def step(carry, x_t):
        h, c = carry
        gates = x_t @ w_ih.T + b_ih + h @ w_hh.T + b_hh
        i = jax.nn.sigmoid(gates[:, 0 * H:1 * H])
        f = jax.nn.sigmoid(gates[:, 1 * H:2 * H])
        g = jnp.tanh(gates[:, 2 * H:3 * H])
        o = jax.nn.sigmoid(gates[:, 3 * H:4 * H])
        c_new = f * c + i * g
        h_new = o * jnp.tanh(c_new)
        return (h_new, c_new), None

    h0 = jnp.zeros((B, H), jnp.float32)
    c0 = jnp.zeros((B, H), jnp.float32)
    (hT, _), _ = jax.lax.scan(step, (h0, c0), jnp.transpose(x, (1, 0, 2)))
    return hT @ w_lin.T + b_lin


def _reference_forward_bf16(x, w_ih, w_hh, b_ih, b_hh, w_lin, b_lin):
    """Pure-JAX reference emulating the kernel numerics (bf16 operands, f32 accum)."""
    B, T, D = x.shape
    H = w_hh.shape[1]
    x_bf = jnp.transpose(x, (1, 0, 2)).astype(jnp.bfloat16)
    w_cat = jnp.concatenate([w_ih.T, w_hh.T], axis=0).astype(jnp.bfloat16)
    b = (b_ih + b_hh).astype(jnp.float32)
    wlin = w_lin.T.astype(jnp.bfloat16)

    def step(carry, x_t):
        h, c = carry
        xh = jnp.concatenate([x_t, h.astype(jnp.bfloat16)], axis=-1)
        gates = jax.lax.dot(xh, w_cat, preferred_element_type=jnp.float32) + b
        i = jax.nn.sigmoid(gates[:, 0 * H:1 * H])
        f = jax.nn.sigmoid(gates[:, 1 * H:2 * H])
        g = jnp.tanh(gates[:, 2 * H:3 * H])
        o = jax.nn.sigmoid(gates[:, 3 * H:4 * H])
        c_new = f * c + i * g
        h_new = o * jnp.tanh(c_new)
        return (h_new, c_new), None

    h0 = jnp.zeros((B, H), jnp.float32)
    c0 = jnp.zeros((B, H), jnp.float32)
    (hT, _), _ = jax.lax.scan(step, (h0, c0), x_bf)
    return (jax.lax.dot(hT.astype(jnp.bfloat16), wlin,
                        preferred_element_type=jnp.float32)
            + b_lin.reshape(1, 1))


if __name__ == "__main__":
    # Small shapes consistent with the module's forward: x is (batch, seq, input_size).
    B, T, D, H = 2, 8, 16, 32

    key = jax.random.PRNGKey(0)
    ks = jax.random.split(key, 7)
    bound = 1.0 / jnp.sqrt(jnp.float32(H))

    x = jax.random.normal(ks[0], (B, T, D), jnp.float32)
    # nn.LSTM parameters (PyTorch layout): weight_ih_l0 (4H,D), weight_hh_l0 (4H,H), biases (4H,)
    w_ih = jax.random.uniform(ks[1], (4 * H, D), jnp.float32, -bound, bound)
    w_hh = jax.random.uniform(ks[2], (4 * H, H), jnp.float32, -bound, bound)
    b_ih = jax.random.uniform(ks[3], (4 * H,), jnp.float32, -bound, bound)
    b_hh = jax.random.uniform(ks[4], (4 * H,), jnp.float32, -bound, bound)
    # nn.Linear(hidden, 1): weight (1, H), bias (1,)
    w_lin = jax.random.uniform(ks[5], (1, H), jnp.float32, -bound, bound)
    b_lin = jax.random.uniform(ks[6], (1,), jnp.float32, -bound, bound)

    out = lstm_linear_forward(x, w_ih, w_hh, b_ih, b_hh, w_lin, b_lin)
    out = jax.block_until_ready(out)
    assert out.shape == (B, 1)

    # Tight check against a reference that uses the same bf16-operand / f32-accum math.
    ref_bf16 = _reference_forward_bf16(x, w_ih, w_hh, b_ih, b_hh, w_lin, b_lin)
    assert jnp.allclose(out, ref_bf16, atol=2e-3, rtol=2e-3), (out, ref_bf16)

    # Looser sanity check against the exact f32 module semantics (bf16 rounding only).
    ref_f32 = _reference_forward_f32(x, w_ih, w_hh, b_ih, b_hh, w_lin, b_lin)
    assert jnp.allclose(out, ref_f32, atol=5e-2, rtol=5e-2), (out, ref_f32)

    print("KERNEL_OK")
</pallas_src>

<mosaic_0001>
module attributes {stable_mosaic.version = 11 : i64} {
  func.func @_lstm_kernel(%arg0: i32, %arg1: i32, %arg2: memref<8x2x16xbf16, #tpu.memory_space<vmem>>, %arg3: memref<48x128xbf16, #tpu.memory_space<vmem>>, %arg4: memref<1x128xf32, #tpu.memory_space<vmem>>, %arg5: memref<32x1xbf16, #tpu.memory_space<vmem>>, %arg6: memref<1x1xf32, #tpu.memory_space<vmem>>, %arg7: memref<2x1xf32, #tpu.memory_space<vmem>>, %arg8: memref<2x32xf32, #tpu.memory_space<vmem>>, %arg9: memref<2x32xf32, #tpu.memory_space<vmem>>, %arg10: memref<2x48xbf16, #tpu.memory_space<vmem>>) attributes {dimension_semantics = [#tpu.dimension_semantics<parallel>, #tpu.dimension_semantics<arbitrary>], iteration_bounds = array<i64: 1, 1>, scalar_prefetch = 0 : i64, scratch_operands = 3 : i64, tpu.core_type = #tpu.core_type<tc>, window_params = [{transform_indices = @transform_0, window_bounds = array<i64: 8, 2, 16>}, {pipeline_mode = #tpu.pipeline_mode<synchronous>, transform_indices = @transform_1, window_bounds = array<i64: 48, 128>}, {pipeline_mode = #tpu.pipeline_mode<synchronous>, transform_indices = @transform_2, window_bounds = array<i64: 1, 128>}, {pipeline_mode = #tpu.pipeline_mode<synchronous>, transform_indices = @transform_3, window_bounds = array<i64: 32, 1>}, {pipeline_mode = #tpu.pipeline_mode<synchronous>, transform_indices = @transform_4, window_bounds = array<i64: 1, 1>}, {transform_indices = @transform_5, window_bounds = array<i64: 2, 1>}]} {
    %c0_i32 = arith.constant 0 : i32
    %0 = arith.cmpi eq, %arg1, %c0_i32 : i32
    %1 = arith.extui %0 : i1 to i32
    %c0_i32_0 = arith.constant 0 : i32
    %2 = arith.cmpi ne, %1, %c0_i32_0 : i32
    scf.if %2 {
      %cst_93 = arith.constant 0.000000e+00 : f32
      %206 = vector.broadcast %cst_93 : f32 to vector<2x32xf32>
      %c0_94 = arith.constant 0 : index
      %c0_95 = arith.constant 0 : index
      %207 = vector.load %arg8[%c0_94, %c0_95] : memref<2x32xf32, #tpu.memory_space<vmem>>, vector<2x32xf32>
      tpu.vector_store %arg8[%c0_94, %c0_95], %206 {strides = array<i32>} : memref<2x32xf32, #tpu.memory_space<vmem>>, vector<2x32xf32>,
      %cst_96 = arith.constant 0.000000e+00 : f32
      %208 = vector.broadcast %cst_96 : f32 to vector<2x32xf32>
      %c0_97 = arith.constant 0 : index
      %c0_98 = arith.constant 0 : index
      %209 = vector.load %arg9[%c0_97, %c0_98] : memref<2x32xf32, #tpu.memory_space<vmem>>, vector<2x32xf32>
      tpu.vector_store %arg9[%c0_97, %c0_98], %208 {strides = array<i32>} : memref<2x32xf32, #tpu.memory_space<vmem>>, vector<2x32xf32>,
    } else {
    }
    %c0 = arith.constant 0 : index
    %c0_1 = arith.constant 0 : index
    %3 = vector.load %arg3[%c0, %c0_1] : memref<48x128xbf16, #tpu.memory_space<vmem>>, vector<48x128xbf16>
    %c0_2 = arith.constant 0 : index
    %c0_3 = arith.constant 0 : index
    %4 = vector.load %arg4[%c0_2, %c0_3] : memref<1x128xf32, #tpu.memory_space<vmem>>, vector<1x128xf32>
    %5 = vector.shape_cast %4 : vector<1x128xf32> to vector<1x128xf32>
    %6 = vector.broadcast %5 : vector<1x128xf32> to vector<2x128xf32>
    %c0_4 = arith.constant 0 : index
    %c0_5 = arith.constant 0 : index
    %7 = vector.load %arg8[%c0_4, %c0_5] : memref<2x32xf32, #tpu.memory_space<vmem>>, vector<2x32xf32>
    %c0_6 = arith.constant 0 : index
    %c0_7 = arith.constant 0 : index
    %8 = vector.load %arg9[%c0_6, %c0_7] : memref<2x32xf32, #tpu.memory_space<vmem>>, vector<2x32xf32>
    %c0_i32_8 = arith.constant 0 : i32
    %9 = arith.index_cast %c0_i32_8 : i32 to index
    %c0_9 = arith.constant 0 : index
    %c0_10 = arith.constant 0 : index
    %10 = vector.load %arg2[%9, %c0_9, %c0_10] : memref<8x2x16xbf16, #tpu.memory_space<vmem>>, vector<1x2x16xbf16>
    %11 = vector.shape_cast %10 : vector<1x2x16xbf16> to vector<2x16xbf16>
    %c0_11 = arith.constant 0 : index
    %c0_12 = arith.constant 0 : index
    %12 = vector.load %arg10[%c0_11, %c0_12] : memref<2x48xbf16, #tpu.memory_space<vmem>>, vector<2x16xbf16>
    tpu.vector_store %arg10[%c0_11, %c0_12], %11 {strides = array<i32>} : memref<2x48xbf16, #tpu.memory_space<vmem>>, vector<2x16xbf16>,
    %13 = arith.truncf %7 : vector<2x32xf32> to vector<2x32xbf16>
    %c0_13 = arith.constant 0 : index
    %c16 = arith.constant 16 : index
    %14 = vector.load %arg10[%c0_13, %c16] : memref<2x48xbf16, #tpu.memory_space<vmem>>, vector<2x32xbf16>
    tpu.vector_store %arg10[%c0_13, %c16], %13 {strides = array<i32>} : memref<2x48xbf16, #tpu.memory_space<vmem>>, vector<2x32xbf16>,
    %c0_14 = arith.constant 0 : index
    %c0_15 = arith.constant 0 : index
    %15 = vector.load %arg10[%c0_14, %c0_15] : memref<2x48xbf16, #tpu.memory_space<vmem>>, vector<2x48xbf16>
    %cst = arith.constant dense<0.000000e+00> : vector<2x128xf32>
    %16 = tpu.matmul %15, %3, %cst {dimension_numbers = #tpu.dot_dimension_numbers<[1], [0], [0], [1], [0, 0, 1, 1], [], []>} : vector<2x48xbf16>, vector<48x128xbf16>, vector<2x128xf32> -> vector<2x128xf32>
    %17 = arith.addf %16, %6 : vector<2x128xf32>
    %18 = arith.negf %17 : vector<2x128xf32>
    %19 = math.exp %18 : vector<2x128xf32>
    %cst_16 = arith.constant 1.000000e+00 : f32
    %20 = vector.broadcast %cst_16 : f32 to vector<2x128xf32>
    %21 = arith.addf %20, %19 : vector<2x128xf32>
    %22 = arith.divf %20, %21 : vector<2x128xf32>
    %23 = vector.extract_strided_slice %22 {offsets = [0, 0], sizes = [2, 32], strides = [1, 1]} : vector<2x128xf32> to vector<2x32xf32>
    %24 = vector.extract_strided_slice %22 {offsets = [0, 32], sizes = [2, 32], strides = [1, 1]} : vector<2x128xf32> to vector<2x32xf32>
    %25 = vector.extract_strided_slice %22 {offsets = [0, 96], sizes = [2, 32], strides = [1, 1]} : vector<2x128xf32> to vector<2x32xf32>
    %26 = vector.extract_strided_slice %17 {offsets = [0, 64], sizes = [2, 32], strides = [1, 1]} : vector<2x128xf32> to vector<2x32xf32>
    %27 = math.tanh %26 : vector<2x32xf32>
    %28 = arith.mulf %24, %8 : vector<2x32xf32>
    %29 = arith.mulf %23, %27 : vector<2x32xf32>
    %30 = arith.addf %28, %29 : vector<2x32xf32>
    %31 = math.tanh %30 : vector<2x32xf32>
    %32 = arith.mulf %25, %31 : vector<2x32xf32>
    %c1_i32 = arith.constant 1 : i32
    %33 = arith.index_cast %c1_i32 : i32 to index
    %c0_17 = arith.constant 0 : index
    %c0_18 = arith.constant 0 : index
    %34 = vector.load %arg2[%33, %c0_17, %c0_18] : memref<8x2x16xbf16, #tpu.memory_space<vmem>>, vector<1x2x16xbf16>
    %35 = vector.shape_cast %34 : vector<1x2x16xbf16> to vector<2x16xbf16>
    %c0_19 = arith.constant 0 : index
    %c0_20 = arith.constant 0 : index
    %36 = vector.load %arg10[%c0_19, %c0_20] : memref<2x48xbf16, #tpu.memory_space<vmem>>, vector<2x16xbf16>
    tpu.vector_store %arg10[%c0_19, %c0_20], %35 {strides = array<i32>} : memref<2x48xbf16, #tpu.memory_space<vmem>>, vector<2x16xbf16>,
    %37 = arith.truncf %32 : vector<2x32xf32> to vector<2x32xbf16>
    %c0_21 = arith.constant 0 : index
    %c16_22 = arith.constant 16 : index
    %38 = vector.load %arg10[%c0_21, %c16_22] : memref<2x48xbf16, #tpu.memory_space<vmem>>, vector<2x32xbf16>
    tpu.vector_store %arg10[%c0_21, %c16_22], %37 {strides = array<i32>} : memref<2x48xbf16, #tpu.memory_space<vmem>>, vector<2x32xbf16>,
    %c0_23 = arith.constant 0 : index
    %c0_24 = arith.constant 0 : index
    %39 = vector.load %arg10[%c0_23, %c0_24] : memref<2x48xbf16, #tpu.memory_space<vmem>>, vector<2x48xbf16>
    %cst_25 = arith.constant dense<0.000000e+00> : vector<2x128xf32>
    %40 = tpu.matmul %39, %3, %cst_25 {dimension_numbers = #tpu.dot_dimension_numbers<[1], [0], [0], [1], [0, 0, 1, 1], [], []>} : vector<2x48xbf16>, vector<48x128xbf16>, vector<2x128xf32> -> vector<2x128xf32>
    %41 = arith.addf %40, %6 : vector<2x128xf32>
    %42 = arith.negf %41 : vector<2x128xf32>
    %43 = math.exp %42 : vector<2x128xf32>
    %cst_26 = arith.constant 1.000000e+00 : f32
    %44 = vector.broadcast %cst_26 : f32 to vector<2x128xf32>
    %45 = arith.addf %44, %43 : vector<2x128xf32>
    %46 = arith.divf %44, %45 : vector<2x128xf32>
    %47 = vector.extract_strided_slice %46 {offsets = [0, 0], sizes = [2, 32], strides = [1, 1]} : vector<2x128xf32> to vector<2x32xf32>
    %48 = vector.extract_strided_slice %46 {offsets = [0, 32], sizes = [2, 32], strides = [1, 1]} : vector<2x128xf32> to vector<2x32xf32>
    %49 = vector.extract_strided_slice %46 {offsets = [0, 96], sizes = [2, 32], strides = [1, 1]} : vector<2x128xf32> to vector<2x32xf32>
    %50 = vector.extract_strided_slice %41 {offsets = [0, 64], sizes = [2, 32], strides = [1, 1]} : vector<2x128xf32> to vector<2x32xf32>
    %51 = math.tanh %50 : vector<2x32xf32>
    %52 = arith.mulf %48, %30 : vector<2x32xf32>
    %53 = arith.mulf %47, %51 : vector<2x32xf32>
    %54 = arith.addf %52, %53 : vector<2x32xf32>
    %55 = math.tanh %54 : vector<2x32xf32>
    %56 = arith.mulf %49, %55 : vector<2x32xf32>
    %c2_i32 = arith.constant 2 : i32
    %57 = arith.index_cast %c2_i32 : i32 to index
    %c0_27 = arith.constant 0 : index
    %c0_28 = arith.constant 0 : index
    %58 = vector.load %arg2[%57, %c0_27, %c0_28] : memref<8x2x16xbf16, #tpu.memory_space<vmem>>, vector<1x2x16xbf16>
    %59 = vector.shape_cast %58 : vector<1x2x16xbf16> to vector<2x16xbf16>
    %c0_29 = arith.constant 0 : index
    %c0_30 = arith.constant 0 : index
    %60 = vector.load %arg10[%c0_29, %c0_30] : memref<2x48xbf16, #tpu.memory_space<vmem>>, vector<2x16xbf16>
    tpu.vector_store %arg10[%c0_29, %c0_30], %59 {strides = array<i32>} : memref<2x48xbf16, #tpu.memory_space<vmem>>, vector<2x16xbf16>,
    %61 = arith.truncf %56 : vector<2x32xf32> to vector<2x32xbf16>
    %c0_31 = arith.constant 0 : index
    %c16_32 = arith.constant 16 : index
    %62 = vector.load %arg10[%c0_31, %c16_32] : memref<2x48xbf16, #tpu.memory_space<vmem>>, vector<2x32xbf16>
    tpu.vector_store %arg10[%c0_31, %c16_32], %61 {strides = array<i32>} : memref<2x48xbf16, #tpu.memory_space<vmem>>, vector<2x32xbf16>,
    %c0_33 = arith.constant 0 : index
    %c0_34 = arith.constant 0 : index
    %63 = vector.load %arg10[%c0_33, %c0_34] : memref<2x48xbf16, #tpu.memory_space<vmem>>, vector<2x48xbf16>
    %cst_35 = arith.constant dense<0.000000e+00> : vector<2x128xf32>
    %64 = tpu.matmul %63, %3, %cst_35 {dimension_numbers = #tpu.dot_dimension_numbers<[1], [0], [0], [1], [0, 0, 1, 1], [], []>} : vector<2x48xbf16>, vector<48x128xbf16>, vector<2x128xf32> -> vector<2x128xf32>
    %65 = arith.addf %64, %6 : vector<2x128xf32>
    %66 = arith.negf %65 : vector<2x128xf32>
    %67 = math.exp %66 : vector<2x128xf32>
    %cst_36 = arith.constant 1.000000e+00 : f32
    %68 = vector.broadcast %cst_36 : f32 to vector<2x128xf32>
    %69 = arith.addf %68, %67 : vector<2x128xf32>
    %70 = arith.divf %68, %69 : vector<2x128xf32>
    %71 = vector.extract_strided_slice %70 {offsets = [0, 0], sizes = [2, 32], strides = [1, 1]} : vector<2x128xf32> to vector<2x32xf32>
    %72 = vector.extract_strided_slice %70 {offsets = [0, 32], sizes = [2, 32], strides = [1, 1]} : vector<2x128xf32> to vector<2x32xf32>
    %73 = vector.extract_strided_slice %70 {offsets = [0, 96], sizes = [2, 32], strides = [1, 1]} : vector<2x128xf32> to vector<2x32xf32>
    %74 = vector.extract_strided_slice %65 {offsets = [0, 64], sizes = [2, 32], strides = [1, 1]} : vector<2x128xf32> to vector<2x32xf32>
    %75 = math.tanh %74 : vector<2x32xf32>
    %76 = arith.mulf %72, %54 : vector<2x32xf32>
    %77 = arith.mulf %71, %75 : vector<2x32xf32>
    %78 = arith.addf %76, %77 : vector<2x32xf32>
    %79 = math.tanh %78 : vector<2x32xf32>
    %80 = arith.mulf %73, %79 : vector<2x32xf32>
    %c3_i32 = arith.constant 3 : i32
    %81 = arith.index_cast %c3_i32 : i32 to index
    %c0_37 = arith.constant 0 : index
    %c0_38 = arith.constant 0 : index
    %82 = vector.load %arg2[%81, %c0_37, %c0_38] : memref<8x2x16xbf16, #tpu.memory_space<vmem>>, vector<1x2x16xbf16>
    %83 = vector.shape_cast %82 : vector<1x2x16xbf16> to vector<2x16xbf16>
    %c0_39 = arith.constant 0 : index
    %c0_40 = arith.constant 0 : index
    %84 = vector.load %arg10[%c0_39, %c0_40] : memref<2x48xbf16, #tpu.memory_space<vmem>>, vector<2x16xbf16>
    tpu.vector_store %arg10[%c0_39, %c0_40], %83 {strides = array<i32>} : memref<2x48xbf16, #tpu.memory_space<vmem>>, vector<2x16xbf16>,
    %85 = arith.truncf %80 : vector<2x32xf32> to vector<2x32xbf16>
    %c0_41 = arith.constant 0 : index
    %c16_42 = arith.constant 16 : index
    %86 = vector.load %arg10[%c0_41, %c16_42] : memref<2x48xbf16, #tpu.memory_space<vmem>>, vector<2x32xbf16>
    tpu.vector_store %arg10[%c0_41, %c16_42], %85 {strides = array<i32>} : memref<2x48xbf16, #tpu.memory_space<vmem>>, vector<2x32xbf16>,
    %c0_43 = arith.constant 0 : index
    %c0_44 = arith.constant 0 : index
    %87 = vector.load %arg10[%c0_43, %c0_44] : memref<2x48xbf16, #tpu.memory_space<vmem>>, vector<2x48xbf16>
    %cst_45 = arith.constant dense<0.000000e+00> : vector<2x128xf32>
    %88 = tpu.matmul %87, %3, %cst_45 {dimension_numbers = #tpu.dot_dimension_numbers<[1], [0], [0], [1], [0, 0, 1, 1], [], []>} : vector<2x48xbf16>, vector<48x128xbf16>, vector<2x128xf32> -> vector<2x128xf32>
    %89 = arith.addf %88, %6 : vector<2x128xf32>
    %90 = arith.negf %89 : vector<2x128xf32>
    %91 = math.exp %90 : vector<2x128xf32>
    %cst_46 = arith.constant 1.000000e+00 : f32
    %92 = vector.broadcast %cst_46 : f32 to vector<2x128xf32>
    %93 = arith.addf %92, %91 : vector<2x128xf32>
    %94 = arith.divf %92, %93 : vector<2x128xf32>
    %95 = vector.extract_strided_slice %94 {offsets = [0, 0], sizes = [2, 32], strides = [1, 1]} : vector<2x128xf32> to vector<2x32xf32>
    %96 = vector.extract_strided_slice %94 {offsets = [0, 32], sizes = [2, 32], strides = [1, 1]} : vector<2x128xf32> to vector<2x32xf32>
    %97 = vector.extract_strided_slice %94 {offsets = [0, 96], sizes = [2, 32], strides = [1, 1]} : vector<2x128xf32> to vector<2x32xf32>
    %98 = vector.extract_strided_slice %89 {offsets = [0, 64], sizes = [2, 32], strides = [1, 1]} : vector<2x128xf32> to vector<2x32xf32>
    %99 = math.tanh %98 : vector<2x32xf32>
    %100 = arith.mulf %96, %78 : vector<2x32xf32>
    %101 = arith.mulf %95, %99 : vector<2x32xf32>
    %102 = arith.addf %100, %101 : vector<2x32xf32>
    %103 = math.tanh %102 : vector<2x32xf32>
    %104 = arith.mulf %97, %103 : vector<2x32xf32>
    %c4_i32 = arith.constant 4 : i32
    %105 = arith.index_cast %c4_i32 : i32 to index
    %c0_47 = arith.constant 0 : index
    %c0_48 = arith.constant 0 : index
    %106 = vector.load %arg2[%105, %c0_47, %c0_48] : memref<8x2x16xbf16, #tpu.memory_space<vmem>>, vector<1x2x16xbf16>
    %107 = vector.shape_cast %106 : vector<1x2x16xbf16> to vector<2x16xbf16>
    %c0_49 = arith.constant 0 : index
    %c0_50 = arith.constant 0 : index
    %108 = vector.load %arg10[%c0_49, %c0_50] : memref<2x48xbf16, #tpu.memory_space<vmem>>, vector<2x16xbf16>
    tpu.vector_store %arg10[%c0_49, %c0_50], %107 {strides = array<i32>} : memref<2x48xbf16, #tpu.memory_space<vmem>>, vector<2x16xbf16>,
    %109 = arith.truncf %104 : vector<2x32xf32> to vector<2x32xbf16>
    %c0_51 = arith.constant 0 : index
    %c16_52 = arith.constant 16 : index
    %110 = vector.load %arg10[%c0_51, %c16_52] : memref<2x48xbf16, #tpu.memory_space<vmem>>, vector<2x32xbf16>
    tpu.vector_store %arg10[%c0_51, %c16_52], %109 {strides = array<i32>} : memref<2x48xbf16, #tpu.memory_space<vmem>>, vector<2x32xbf16>,
    %c0_53 = arith.constant 0 : index
    %c0_54 = arith.constant 0 : index
    %111 = vector.load %arg10[%c0_53, %c0_54] : memref<2x48xbf16, #tpu.memory_space<vmem>>, vector<2x48xbf16>
    %cst_55 = arith.constant dense<0.000000e+00> : vector<2x128xf32>
    %112 = tpu.matmul %111, %3, %cst_55 {dimension_numbers = #tpu.dot_dimension_numbers<[1], [0], [0], [1], [0, 0, 1, 1], [], []>} : vector<2x48xbf16>, vector<48x128xbf16>, vector<2x128xf32> -> vector<2x128xf32>
    %113 = arith.addf %112, %6 : vector<2x128xf32>
    %114 = arith.negf %113 : vector<2x128xf32>
    %115 = math.exp %114 : vector<2x128xf32>
    %cst_56 = arith.constant 1.000000e+00 : f32
    %116 = vector.broadcast %cst_56 : f32 to vector<2x128xf32>
    %117 = arith.addf %116, %115 : vector<2x128xf32>
    %118 = arith.divf %116, %117 : vector<2x128xf32>
    %119 = vector.extract_strided_slice %118 {offsets = [0, 0], sizes = [2, 32], strides = [1, 1]} : vector<2x128xf32> to vector<2x32xf32>
    %120 = vector.extract_strided_slice %118 {offsets = [0, 32], sizes = [2, 32], strides = [1, 1]} : vector<2x128xf32> to vector<2x32xf32>
    %121 = vector.extract_strided_slice %118 {offsets = [0, 96], sizes = [2, 32], strides = [1, 1]} : vector<2x128xf32> to vector<2x32xf32>
    %122 = vector.extract_strided_slice %113 {offsets = [0, 64], sizes = [2, 32], strides = [1, 1]} : vector<2x128xf32> to vector<2x32xf32>
    %123 = math.tanh %122 : vector<2x32xf32>
    %124 = arith.mulf %120, %102 : vector<2x32xf32>
    %125 = arith.mulf %119, %123 : vector<2x32xf32>
    %126 = arith.addf %124, %125 : vector<2x32xf32>
    %127 = math.tanh %126 : vector<2x32xf32>
    %128 = arith.mulf %121, %127 : vector<2x32xf32>
    %c5_i32 = arith.constant 5 : i32
    %129 = arith.index_cast %c5_i32 : i32 to index
    %c0_57 = arith.constant 0 : index
    %c0_58 = arith.constant 0 : index
    %130 = vector.load %arg2[%129, %c0_57, %c0_58] : memref<8x2x16xbf16, #tpu.memory_space<vmem>>, vector<1x2x16xbf16>
    %131 = vector.shape_cast %130 : vector<1x2x16xbf16> to vector<2x16xbf16>
    %c0_59 = arith.constant 0 : index
    %c0_60 = arith.constant 0 : index
    %132 = vector.load %arg10[%c0_59, %c0_60] : memref<2x48xbf16, #tpu.memory_space<vmem>>, vector<2x16xbf16>
    tpu.vector_store %arg10[%c0_59, %c0_60], %131 {strides = array<i32>} : memref<2x48xbf16, #tpu.memory_space<vmem>>, vector<2x16xbf16>,
    %133 = arith.truncf %128 : vector<2x32xf32> to vector<2x32xbf16>
    %c0_61 = arith.constant 0 : index
    %c16_62 = arith.constant 16 : index
    %134 = vector.load %arg10[%c0_61, %c16_62] : memref<2x48xbf16, #tpu.memory_space<vmem>>, vector<2x32xbf16>
    tpu.vector_store %arg10[%c0_61, %c16_62], %133 {strides = array<i32>} : memref<2x48xbf16, #tpu.memory_space<vmem>>, vector<2x32xbf16>,
    %c0_63 = arith.constant 0 : index
    %c0_64 = arith.constant 0 : index
    %135 = vector.load %arg10[%c0_63, %c0_64] : memref<2x48xbf16, #tpu.memory_space<vmem>>, vector<2x48xbf16>
    %cst_65 = arith.constant dense<0.000000e+00> : vector<2x128xf32>
    %136 = tpu.matmul %135, %3, %cst_65 {dimension_numbers = #tpu.dot_dimension_numbers<[1], [0], [0], [1], [0, 0, 1, 1], [], []>} : vector<2x48xbf16>, vector<48x128xbf16>, vector<2x128xf32> -> vector<2x128xf32>
    %137 = arith.addf %136, %6 : vector<2x128xf32>
    %138 = arith.negf %137 : vector<2x128xf32>
    %139 = math.exp %138 : vector<2x128xf32>
    %cst_66 = arith.constant 1.000000e+00 : f32
    %140 = vector.broadcast %cst_66 : f32 to vector<2x128xf32>
    %141 = arith.addf %140, %139 : vector<2x128xf32>
    %142 = arith.divf %140, %141 : vector<2x128xf32>
    %143 = vector.extract_strided_slice %142 {offsets = [0, 0], sizes = [2, 32], strides = [1, 1]} : vector<2x128xf32> to vector<2x32xf32>
    %144 = vector.extract_strided_slice %142 {offsets = [0, 32], sizes = [2, 32], strides = [1, 1]} : vector<2x128xf32> to vector<2x32xf32>
    %145 = vector.extract_strided_slice %142 {offsets = [0, 96], sizes = [2, 32], strides = [1, 1]} : vector<2x128xf32> to vector<2x32xf32>
    %146 = vector.extract_strided_slice %137 {offsets = [0, 64], sizes = [2, 32], strides = [1, 1]} : vector<2x128xf32> to vector<2x32xf32>
    %147 = math.tanh %146 : vector<2x32xf32>
    %148 = arith.mulf %144, %126 : vector<2x32xf32>
    %149 = arith.mulf %143, %147 : vector<2x32xf32>
    %150 = arith.addf %148, %149 : vector<2x32xf32>
    %151 = math.tanh %150 : vector<2x32xf32>
    %152 = arith.mulf %145, %151 : vector<2x32xf32>
    %c6_i32 = arith.constant 6 : i32
    %153 = arith.index_cast %c6_i32 : i32 to index
    %c0_67 = arith.constant 0 : index
    %c0_68 = arith.constant 0 : index
    %154 = vector.load %arg2[%153, %c0_67, %c0_68] : memref<8x2x16xbf16, #tpu.memory_space<vmem>>, vector<1x2x16xbf16>
    %155 = vector.shape_cast %154 : vector<1x2x16xbf16> to vector<2x16xbf16>
    %c0_69 = arith.constant 0 : index
    %c0_70 = arith.constant 0 : index
    %156 = vector.load %arg10[%c0_69, %c0_70] : memref<2x48xbf16, #tpu.memory_space<vmem>>, vector<2x16xbf16>
    tpu.vector_store %arg10[%c0_69, %c0_70], %155 {strides = array<i32>} : memref<2x48xbf16, #tpu.memory_space<vmem>>, vector<2x16xbf16>,
    %157 = arith.truncf %152 : vector<2x32xf32> to vector<2x32xbf16>
    %c0_71 = arith.constant 0 : index
    %c16_72 = arith.constant 16 : index
    %158 = vector.load %arg10[%c0_71, %c16_72] : memref<2x48xbf16, #tpu.memory_space<vmem>>, vector<2x32xbf16>
    tpu.vector_store %arg10[%c0_71, %c16_72], %157 {strides = array<i32>} : memref<2x48xbf16, #tpu.memory_space<vmem>>, vector<2x32xbf16>,
    %c0_73 = arith.constant 0 : index
    %c0_74 = arith.constant 0 : index
    %159 = vector.load %arg10[%c0_73, %c0_74] : memref<2x48xbf16, #tpu.memory_space<vmem>>, vector<2x48xbf16>
    %cst_75 = arith.constant dense<0.000000e+00> : vector<2x128xf32>
    %160 = tpu.matmul %159, %3, %cst_75 {dimension_numbers = #tpu.dot_dimension_numbers<[1], [0], [0], [1], [0, 0, 1, 1], [], []>} : vector<2x48xbf16>, vector<48x128xbf16>, vector<2x128xf32> -> vector<2x128xf32>
    %161 = arith.addf %160, %6 : vector<2x128xf32>
    %162 = arith.negf %161 : vector<2x128xf32>
    %163 = math.exp %162 : vector<2x128xf32>
    %cst_76 = arith.constant 1.000000e+00 : f32
    %164 = vector.broadcast %cst_76 : f32 to vector<2x128xf32>
    %165 = arith.addf %164, %163 : vector<2x128xf32>
    %166 = arith.divf %164, %165 : vector<2x128xf32>
    %167 = vector.extract_strided_slice %166 {offsets = [0, 0], sizes = [2, 32], strides = [1, 1]} : vector<2x128xf32> to vector<2x32xf32>
    %168 = vector.extract_strided_slice %166 {offsets = [0, 32], sizes = [2, 32], strides = [1, 1]} : vector<2x128xf32> to vector<2x32xf32>
    %169 = vector.extract_strided_slice %166 {offsets = [0, 96], sizes = [2, 32], strides = [1, 1]} : vector<2x128xf32> to vector<2x32xf32>
    %170 = vector.extract_strided_slice %161 {offsets = [0, 64], sizes = [2, 32], strides = [1, 1]} : vector<2x128xf32> to vector<2x32xf32>
    %171 = math.tanh %170 : vector<2x32xf32>
    %172 = arith.mulf %168, %150 : vector<2x32xf32>
    %173 = arith.mulf %167, %171 : vector<2x32xf32>
    %174 = arith.addf %172, %173 : vector<2x32xf32>
    %175 = math.tanh %174 : vector<2x32xf32>
    %176 = arith.mulf %169, %175 : vector<2x32xf32>
    %c7_i32 = arith.constant 7 : i32
    %177 = arith.index_cast %c7_i32 : i32 to index
    %c0_77 = arith.constant 0 : index
    %c0_78 = arith.constant 0 : index
    %178 = vector.load %arg2[%177, %c0_77, %c0_78] : memref<8x2x16xbf16, #tpu.memory_space<vmem>>, vector<1x2x16xbf16>
    %179 = vector.shape_cast %178 : vector<1x2x16xbf16> to vector<2x16xbf16>
    %c0_79 = arith.constant 0 : index
    %c0_80 = arith.constant 0 : index
    %180 = vector.load %arg10[%c0_79, %c0_80] : memref<2x48xbf16, #tpu.memory_space<vmem>>, vector<2x16xbf16>
    tpu.vector_store %arg10[%c0_79, %c0_80], %179 {strides = array<i32>} : memref<2x48xbf16, #tpu.memory_space<vmem>>, vector<2x16xbf16>,
    %181 = arith.truncf %176 : vector<2x32xf32> to vector<2x32xbf16>
    %c0_81 = arith.constant 0 : index
    %c16_82 = arith.constant 16 : index
    %182 = vector.load %arg10[%c0_81, %c16_82] : memref<2x48xbf16, #tpu.memory_space<vmem>>, vector<2x32xbf16>
    tpu.vector_store %arg10[%c0_81, %c16_82], %181 {strides = array<i32>} : memref<2x48xbf16, #tpu.memory_space<vmem>>, vector<2x32xbf16>,
    %c0_83 = arith.constant 0 : index
    %c0_84 = arith.constant 0 : index
    %183 = vector.load %arg10[%c0_83, %c0_84] : memref<2x48xbf16, #tpu.memory_space<vmem>>, vector<2x48xbf16>
    %cst_85 = arith.constant dense<0.000000e+00> : vector<2x128xf32>
    %184 = tpu.matmul %183, %3, %cst_85 {dimension_numbers = #tpu.dot_dimension_numbers<[1], [0], [0], [1], [0, 0, 1, 1], [], []>} : vector<2x48xbf16>, vector<48x128xbf16>, vector<2x128xf32> -> vector<2x128xf32>
    %185 = arith.addf %184, %6 : vector<2x128xf32>
    %186 = arith.negf %185 : vector<2x128xf32>
    %187 = math.exp %186 : vector<2x128xf32>
    %cst_86 = arith.constant 1.000000e+00 : f32
    %188 = vector.broadcast %cst_86 : f32 to vector<2x128xf32>
    %189 = arith.addf %188, %187 : vector<2x128xf32>
    %190 = arith.divf %188, %189 : vector<2x128xf32>
    %191 = vector.extract_strided_slice %190 {offsets = [0, 0], sizes = [2, 32], strides = [1, 1]} : vector<2x128xf32> to vector<2x32xf32>
    %192 = vector.extract_strided_slice %190 {offsets = [0, 32], sizes = [2, 32], strides = [1, 1]} : vector<2x128xf32> to vector<2x32xf32>
    %193 = vector.extract_strided_slice %190 {offsets = [0, 96], sizes = [2, 32], strides = [1, 1]} : vector<2x128xf32> to vector<2x32xf32>
    %194 = vector.extract_strided_slice %185 {offsets = [0, 64], sizes = [2, 32], strides = [1, 1]} : vector<2x128xf32> to vector<2x32xf32>
    %195 = math.tanh %194 : vector<2x32xf32>
    %196 = arith.mulf %192, %174 : vector<2x32xf32>
    %197 = arith.mulf %191, %195 : vector<2x32xf32>
    %198 = arith.addf %196, %197 : vector<2x32xf32>
    %199 = math.tanh %198 : vector<2x32xf32>
    %200 = arith.mulf %193, %199 : vector<2x32xf32>
    %c8_i32 = arith.constant 8 : i32
    %c0_87 = arith.constant 0 : index
    %c0_88 = arith.constant 0 : index
    %201 = vector.load %arg8[%c0_87, %c0_88] : memref<2x32xf32, #tpu.memory_space<vmem>>, vector<2x32xf32>
    tpu.vector_store %arg8[%c0_87, %c0_88], %200 {strides = array<i32>} : memref<2x32xf32, #tpu.memory_space<vmem>>, vector<2x32xf32>,
    %c0_89 = arith.constant 0 : index
    %c0_90 = arith.constant 0 : index
    %202 = vector.load %arg9[%c0_89, %c0_90] : memref<2x32xf32, #tpu.memory_space<vmem>>, vector<2x32xf32>
    tpu.vector_store %arg9[%c0_89, %c0_90], %198 {strides = array<i32>} : memref<2x32xf32, #tpu.memory_space<vmem>>, vector<2x32xf32>,
    %c0_i32_91 = arith.constant 0 : i32
    %203 = arith.cmpi eq, %arg1, %c0_i32_91 : i32
    %204 = arith.extui %203 : i1 to i32
    %c0_i32_92 = arith.constant 0 : i32
    %205 = arith.cmpi ne, %204, %c0_i32_92 : i32
    scf.if %205 {
      %206 = arith.truncf %200 : vector<2x32xf32> to vector<2x32xbf16>
      %c0_93 = arith.constant 0 : index
      %c0_94 = arith.constant 0 : index
      %207 = vector.load %arg5[%c0_93, %c0_94] : memref<32x1xbf16, #tpu.memory_space<vmem>>, vector<32x1xbf16>
      %cst_95 = arith.constant dense<0.000000e+00> : vector<2x1xf32>
      %208 = tpu.matmul %206, %207, %cst_95 {dimension_numbers = #tpu.dot_dimension_numbers<[1], [0], [0], [1], [0, 0, 1, 1], [], []>} : vector<2x32xbf16>, vector<32x1xbf16>, vector<2x1xf32> -> vector<2x1xf32>
      %c0_96 = arith.constant 0 : index
      %c0_97 = arith.constant 0 : index
      %209 = vector.load %arg6[%c0_96, %c0_97] : memref<1x1xf32, #tpu.memory_space<vmem>>, vector<1x1xf32>
      %210 = vector.broadcast %209 : vector<1x1xf32> to vector<2x1xf32>
      %211 = arith.addf %208, %210 : vector<2x1xf32>
      %c0_98 = arith.constant 0 : index
      %c0_99 = arith.constant 0 : index
      %212 = vector.load %arg7[%c0_98, %c0_99] : memref<2x1xf32, #tpu.memory_space<vmem>>, vector<2x1xf32>
      tpu.vector_store %arg7[%c0_98, %c0_99], %211 {strides = array<i32>} : memref<2x1xf32, #tpu.memory_space<vmem>>, vector<2x1xf32>,
    } else {
    }
    return
  }
  func.func @transform_0(%arg0: i32, %arg1: i32) -> (i32, i32, i32) {
    %c0_i32 = arith.constant 0 : i32
    %c0_i32_0 = arith.constant 0 : i32
    return %arg1, %arg0, %c0_i32 : i32, i32, i32
  }
  func.func @transform_1(%arg0: i32, %arg1: i32) -> (i32, i32) {
    %c0_i32 = arith.constant 0 : i32
    %c0_i32_0 = arith.constant 0 : i32
    %c0_i32_1 = arith.constant 0 : i32
    return %c0_i32, %c0_i32_0 : i32, i32
  }
  func.func @transform_2(%arg0: i32, %arg1: i32) -> (i32, i32) {
    %c0_i32 = arith.constant 0 : i32
    %c0_i32_0 = arith.constant 0 : i32
    %c0_i32_1 = arith.constant 0 : i32
    return %c0_i32, %c0_i32_0 : i32, i32
  }
  func.func @transform_3(%arg0: i32, %arg1: i32) -> (i32, i32) {
    %c0_i32 = arith.constant 0 : i32
    %c0_i32_0 = arith.constant 0 : i32
    %c0_i32_1 = arith.constant 0 : i32
    return %c0_i32, %c0_i32_0 : i32, i32
  }
  func.func @transform_4(%arg0: i32, %arg1: i32) -> (i32, i32) {
    %c0_i32 = arith.constant 0 : i32
    %c0_i32_0 = arith.constant 0 : i32
    %c0_i32_1 = arith.constant 0 : i32
    return %c0_i32, %c0_i32_0 : i32, i32
  }
  func.func @transform_5(%arg0: i32, %arg1: i32) -> (i32, i32) {
    %c0_i32 = arith.constant 0 : i32
    %c0_i32_0 = arith.constant 0 : i32
    return %arg0, %c0_i32 : i32, i32
  }
}

</mosaic_0001>

<bundles_post_ra>
// kernel: tpu_custom_call.1
= control target key start
LH: loop header
LB: loop body
LE: loop exit
PB: predicated region body
PF: predicated region fallthrough
CT: control target
= control target key end

     0   :  { %s1594_s0 = inlined_call_operand.hbm [shape: bf16[8,2,16], index: 0, kind: input, shape index: {}]   ;;  %s1595_s1 = inlined_call_operand.hbm [shape: bf16[48,128], index: 1, kind: input, shape index: {}]   ;;  %s1596_s2 = inlined_call_operand.hbm [shape: f32[1,128], index: 2, kind: input, shape index: {}]   ;;  %s1597_s3 = inlined_call_operand.hbm [shape: bf16[32,1], index: 3, kind: input, shape index: {}]   ;;  %s1598_s4 = inlined_call_operand.<no memory space> [shape: f32[1,1], index: 4, kind: input, shape index: {}]   ;;  %s1599_s5 = inlined_call_operand.hbm [shape: f32[2,1], index: 5, kind: output, shape index: {}]  }
   0x1   :  { %v10_v0 = vstv %s1598_s4 }
   0x2   :  { %11 = vst [vmem:[#allocation5] sm:$0x1] %v10_v0 }
   0x3   :  { %12 = vsyncpa [#allocation7], 0 }
   0x4   :  { %13 = vsyncpa [#allocation10], 0 }
   0x5   :  { %14 = vsyncpa [#allocation13], 0 }
   0x6   :  { %15 = vsyncpa [#allocation8], 0  ;;  %s1304_s20 = smov [#allocation9]   ;;  %s1186_s24 = scalar_lea.hbm %s1595_s1, 384 }
   0x7   :  { %s33_s21 = sshll.u32 %s1304_s20, 4  ;;  %p1187_p0 = scmp.ne.s32.totalorder %s1595_s1, %s1186_s24  ;;  %s34_s21 = int_to_ptr.vmem [resolvable:$true] %s33_s21 }
   0x8   :  { %p1190_p1 = scmp.lt.u32.totalorder %s1186_s24, %s1595_s1 }
   0xa   :  { %p1192_p2 = pnand %p1190_p1, %p1187_p0 }
   0xc   :  { %1195 = shalt.err (!%p1192_p2)
}
   0xd   :  { %s1196_s4 = scalar_lea.vmem %s34_s21, 384  ;;  %p1201_p4 = scmp.lt.s32.totalorder %s34_s21, %s34_s21 }
   0xe   :  { %p1197_p3 = scmp.ne.s32.totalorder %s34_s21, %s1196_s4  ;;  %p1202_p5 = scmp.lt.s32.totalorder %s1196_s4, %s1196_s4 }
  0x10   :  { %p1203_p6 = por %p1202_p5, %p1201_p4 }
  0x12   :  { %p1204_p7 = pnand %p1203_p6, %p1197_p3 }
  0x14   :  { %1207 = shalt.err (!%p1204_p7)
}
  0x15   :  { %s1305_s29 = smov 64   ;;  %s1306_s30 = smov 4  }
  0x16   :  { %39 = dma.hbm_to_vmem [thread:$0]  %s1595_s1, 384, %s34_s21, [#allocation10], %s1305_s29, %s1305_s29, %s1306_s30  }
  0x17   :  { %s1307_s8 = smov [#allocation6]   ;;  %s1208_s12 = scalar_lea.hbm %s1594_s0, 128 }
  0x18   :  { %s21_s9 = sshll.u32 %s1307_s8, 4  ;;  %p1209_p8 = scmp.ne.s32.totalorder %s1594_s0, %s1208_s12  ;;  %s22_s9 = int_to_ptr.vmem [resolvable:$true] %s21_s9 }
  0x19   :  { %p1212_p9 = scmp.lt.u32.totalorder %s1208_s12, %s1594_s0 }
  0x1b   :  { %p1214_p10 = pnand %p1212_p9, %p1209_p8 }
  0x1d   :  { %1217 = shalt.err (!%p1214_p10)
}
  0x1e   :  { %s1218_s17 = scalar_lea.vmem %s22_s9, 128  ;;  %p1223_p12 = scmp.lt.s32.totalorder %s22_s9, %s22_s9 }
  0x1f   :  { %p1219_p11 = scmp.ne.s32.totalorder %s22_s9, %s1218_s17  ;;  %p1224_p13 = scmp.lt.s32.totalorder %s1218_s17, %s1218_s17 }
  0x21   :  { %p1225_p0 = por %p1224_p13, %p1223_p12 }
  0x23   :  { %p1226_p1 = pnand %p1225_p0, %p1219_p11 }
  0x25   :  { %1229 = shalt.err (!%p1226_p1)
}
  0x26   :  { %s1308_s1 = smov 16   ;;  %s1309_s18 = smov 1  }
  0x27   :  { %27 = dma.hbm_to_vmem [thread:$0]  %s1594_s0, 128, %s22_s9, [#allocation7], %s1308_s1, %s1308_s1, %s1309_s18  }
  0x28   :  { %s1310_s21 = smov [#allocation11]   ;;  %s1311_s23 = smov [#allocation12]  }
  0x29   :  { %s46_s22 = sshll.u32 %s1310_s21, 4  ;;  %s55_s24 = sshll.u32 %s1311_s23, 4  ;;  %s47_s22 = int_to_ptr.vmem [resolvable:$true] %s46_s22  ;;  %s1381_s24 = int_to_ptr.vmem [resolvable:$true] %s55_s24 }
  0x2a   :  { %s1230_s27 = scalar_lea.hbm %s1596_s2, 16 }
  0x2b   :  { %p1231_p2 = scmp.ne.s32.totalorder %s1596_s2, %s1230_s27  ;;  %p1234_p3 = scmp.lt.u32.totalorder %s1230_s27, %s1596_s2 }
  0x2d   :  { %p1236_p4 = pnand %p1234_p3, %p1231_p2 }
  0x2f   :  { %1239 = shalt.err (!%p1236_p4)
}
  0x30   :  { %s1240_s0 = scalar_lea.vmem %s47_s22, 16  ;;  %s1244_s8 = scalar_lea.vmem %s47_s22, 32 }
  0x31   :  { %p1241_p5 = scmp.ne.s32.totalorder %s47_s22, %s1240_s0  ;;  %p1245_p6 = scmp.lt.s32.totalorder %s47_s22, %s47_s22 }
  0x32   :  { %p1246_p7 = scmp.lt.s32.totalorder %s1244_s8, %s1240_s0 }
  0x34   :  { %p1247_p8 = por %p1246_p7, %p1245_p6 }
  0x36   :  { %p1248_p9 = pnand %p1247_p8, %p1241_p5 }
  0x38   :  { %1251 = shalt.err (!%p1248_p9)
}
  0x39   :  { %49 = dma.hbm_to_vmem [thread:$0]  %s1596_s2, 16, %s47_s22, [#allocation10]  }
  0x3a   :  { %s1252_s13 = scalar_lea.hbm %s1597_s3, 256 }
  0x3b   :  { %p1253_p10 = scmp.ne.s32.totalorder %s1597_s3, %s1252_s13  ;;  %p1256_p11 = scmp.lt.u32.totalorder %s1252_s13, %s1597_s3 }
  0x3d   :  { %p1258_p12 = pnand %p1256_p11, %p1253_p10 }
  0x3f   :  { %1261 = shalt.err (!%p1258_p12)
}
  0x40   :  { %s1262_s18 = scalar_lea.vmem %s1381_s24, 256  ;;  %p1267_p0 = scmp.lt.s32.totalorder %s1381_s24, %s1381_s24 }
  0x41   :  { %p1263_p13 = scmp.ne.s32.totalorder %s1381_s24, %s1262_s18  ;;  %p1268_p1 = scmp.lt.s32.totalorder %s1262_s18, %s1262_s18 }
  0x43   :  { %p1269_p2 = por %p1268_p1, %p1267_p0 }
  0x45   :  { %p1270_p3 = pnand %p1269_p2, %p1263_p13 }
  0x47   :  { %1273 = shalt.err (!%p1270_p3)
}
  0x48   :  { %61 = dma.hbm_to_vmem [thread:$0]  %s1597_s3, 256, %s1381_s24, [#allocation13], %s1305_s29, %s1305_s29, %s1306_s30  }
  0x49   :  { %1296 = dma.done.wait [#allocation7], 128  }
  0x4a   :  { %1297 = vsyncadd [#allocation7], 4294967168 }
  0x4b   :  { %1298 = dma.done.wait [#allocation10], 400  }
  0x4c   :  { %1299 = vsyncadd [#allocation10], 4294966896 }
  0x4d   :  { %1300 = dma.done.wait [#allocation13], 256  }
  0x4e   :  { %1301 = vsyncadd [#allocation13], 4294967040  ;;  %vm81_vm0 = vcmask 254976   ;;  %v107_v1 = vlaneseq  ;;  %v1312_v2 = vmov 0.0   ;;  %v1313_v3 = vmov 1966171168  }
  0x4f   :  { %82 = vst.msk [vmem:[#allocation2] sm:$0x3] %vm81_vm0, %v1312_v2  ;;  %v105_v4 = vunpack.c.l.s4 %v1313_v3  ;;  %83 = vst.msk [vmem:[#allocation3] sm:$0x3] %vm81_vm0, %v1312_v2  ;;  %1014 = vmatprep.subr.bf16.mxu0 %v1312_v2  ;;  %1024 = vmatprep.subr.bf16.mxu1 %v1312_v2  ;;  %vm100_vm1 = vcmask 122880   ;;  %v1423_v8 = vld [vmem:[#allocation9] sm:$0xff]  }
  0x50   :  { %v108_v6 = vshrl.u32 %v107_v1, 7  ;;  %v99_v10 = vld [vmem:[#allocation6] sm:$0x1]  ;;  %1015 = vmatpush3.bf16.msra.mxu0 %v1423_v8  ;;  %v1427_v12 = vld [vmem:[#allocation9 + $0x8] sm:$0xff]   ;;  %1025 = vmatpush3.bf16.msra.mxu1 %v1423_v8  ;;  %vm1314_vm2 = vmmov 0   ;;  %s1315_s3 = smov 32  }
  0x51   :  { %v106_v5 = vunpack.c.0.s8 %v105_v4  ;;  %101 = vst.msk [vmem:[#allocation4] sm:$0x1] %vm100_vm1, %v99_v10  ;;  %1016 = vmatprep.subr.bf16.mxu0 %v1312_v2  ;;  %1020 = vmatprep.mubr.msk.bf16.mxu0 %vm1314_vm2, %v1312_v2  ;;  %v1440_v16 = vld [vmem:[#allocation9 + $0x10] sm:$0xff]   ;;  %vm121_vm3 = vcmask 385152   ;;  %v215_v18 = vld [vmem:[#allocation6 + $0x1] sm:$0x1] }
  0x52   :  { %1026 = vmatprep.subr.bf16.mxu1 %v1312_v2  ;;  %1030 = vmatprep.mubr.msk.bf16.mxu1 %vm1314_vm2, %v1312_v2  ;;  %vm142_vm4 = vcmask 392192   ;;  %v1461_v20 = vld [vmem:[#allocation11] ss:$0 sm:$0xff]  ;;  %s1316_s30 = smov 48   ;;  %v306_v44 = vld [vmem:[#allocation6 + $0x2] sm:$0x1] }
  0x53   :  { %v1421_v7 = vsub.s32 %v106_v5, %v108_v6  ;;  %v397_v5 = vld [vmem:[#allocation6 + $0x3] sm:$0x1]  ;;  %vm892_vm5 = vcmask 261120   ;;  %vm936_vm6 = vcmask 1024  }
  0x54   :  { %1017 = vmatpush3.bf16.msra.mxu0 %v1427_v12  ;;  %1027 = vmatpush3.bf16.msra.mxu1 %v1427_v12 }
  0x55   :  { %1018 = vmatprep.subr.bf16.mxu0 %v1312_v2  ;;  %1028 = vmatprep.subr.bf16.mxu1 %v1312_v2 }
  0x56   :  { %v97_v9 = vld [vmem:[#allocation2] sm:$0x3]  ;;  %v98_v14 = vld [vmem:[#allocation3] sm:$0x3] }
  0x57   :  { %v102_v11 = vpack.c.bf16 %v97_v9, %v97_v9  ;;  %194 = vrot.lane.b32.xlu1 %v98_v14, %s1315_s3 }
  0x58   :  { %1019 = vmatpush3.bf16.msra.mxu0 %v1440_v16  ;;  %1029 = vmatpush3.bf16.msra.mxu1 %v1440_v16 }
  0x59   :  { %v110_v13 = vrot.slane %v102_v11, %v1421_v7  ;;  %1034 = vmatprep.subr.bf16.mxu0 %v1312_v2  ;;  %1044 = vmatprep.subr.bf16.mxu1 %v1312_v2 }
  0x5b   :  { %v117_v15 = vrot.slane %v110_v13, %v1421_v7 }
  0x5d   :  { %118 = vrot.lane.b32.xlu0 %v117_v15, %s1308_s1  ;;  %s1317_s1 = smov 96  }
  0xc9   :  { %v195_v33 = vpop.permute.xlu1 %194 }
  0xcf   :  { %v119_v17 = vpop.permute.xlu0 %118 }
  0xd0   :  { %122 = vst.msk [vmem:[#allocation4] sm:$0x1] %vm121_vm3, %v119_v17 }
  0xd7   :  { %v123_v19 = vld [vmem:[#allocation4] sm:$0x1] }
  0xd8   :  { %216 = vst.msk [vmem:[#allocation4] sm:$0x1] %vm100_vm1, %v215_v18  ;;  %1021 = vmatmul.mubr.msk.bf16.vlgmr.msra.gmra.mrb[0].mxu0 %vm142_vm4, %v123_v19 }
  0xd9   :  { %1035 = vmatpush3.bf16.msra.mxu0 %v1423_v8  ;;  %1040 = vmatprep.mubr.msk.bf16.mxu0 %vm1314_vm2, %v1312_v2 }
  0xda   :  { %1036 = vmatprep.subr.bf16.mxu0 %v1312_v2 }
  0xdd   :  { %1037 = vmatpush3.bf16.msra.mxu0 %v1427_v12 }
  0xde   :  { %1038 = vmatprep.subr.bf16.mxu0 %v1312_v2 }
  0xe1   :  { %1039 = vmatpush3.bf16.msra.mxu0 %v1440_v16 }
  0xe2   :  { %1054 = vmatprep.subr.bf16.mxu0 %v1312_v2 }
 0x1ab   :  { %v180_v21 = vpop.f32.mrb[0].mxu0 }
 0x1ac   :  { %v181_v22 = vadd.f32 %v1461_v20, %v180_v21  ;;  %v1022_v23 = vpop.f32.mrb[1].mxu0 }
 0x1ad   :  { %v183_v24 = vpop.f32.mrb[2].mxu0 }
 0x1ae   :  { %1122 = vtanh.f32 %v181_v22  ;;  %v1023_v25 = vpop.f32.mrb[3].mxu0  ;;  %v960_v27 = vmul.f32 -1.442695, %v181_v22 }
 0x1b0   :  { %1124 = vpow2.f32 %v960_v27 }
 0x1b8   :  { %v1123_v26 = vpop.eup %1122 }
 0x1b9   :  { %199 = vrot.lane.b32.xlu0 %v1123_v26, %s1305_s29 }
 0x1ba   :  { %v1125_v28 = vpop.eup %1124 }
 0x1bb   :  { %v189_v29 = vadd.f32 1.0, %v1125_v28 }
 0x1bd   :  { %1126 = vrcp.f32 %v189_v29 }
 0x1c7   :  { %v1127_v30 = vpop.eup %1126 }
 0x1c8   :  { %v197_v34 = vmul.f32 %v1127_v30, %v195_v33 }
 0x22b   :  { %v200_v31 = vpop.permute.xlu0 %199 }
 0x22c   :  { %v202_v32 = vmul.f32 %v1127_v30, %v200_v31 }
 0x22e   :  { %204 = vrot.lane.b32.xlu1 %v202_v32, %s1315_s3 }
 0x2a0   :  { %v205_v35 = vpop.permute.xlu1 %204 }
 0x2a1   :  { %v207_v36 = vadd.f32 %v205_v35, %v197_v34 }
 0x2a3   :  { %1128 = vtanh.f32 %v207_v36 }
 0x2ad   :  { %v1129_v37 = vpop.eup %1128 }
 0x2ae   :  { %210 = vrot.lane.b32.xlu0 %v1129_v37, %s1305_s29 }
 0x320   :  { %v211_v38 = vpop.permute.xlu0 %210 }
 0x321   :  { %v213_v39 = vmul.f32 %v1127_v30, %v211_v38 }
 0x323   :  { %v217_v40 = vpack.c.bf16 %v213_v39, %v213_v39 }
 0x325   :  { %v225_v41 = vrot.slane %v217_v40, %v1421_v7 }
 0x327   :  { %v232_v42 = vrot.slane %v225_v41, %v1421_v7 }
 0x329   :  { %233 = vrot.lane.b32.xlu1 %v232_v42, %s1316_s30 }
 0x39b   :  { %v234_v43 = vpop.permute.xlu1 %233 }
 0x39c   :  { %236 = vst.msk [vmem:[#allocation4] sm:$0x1] %vm121_vm3, %v234_v43 }
 0x3a3   :  { %v237_v45 = vld [vmem:[#allocation4] sm:$0x1] }
 0x3a4   :  { %307 = vst.msk [vmem:[#allocation4] sm:$0x1] %vm100_vm1, %v306_v44  ;;  %1031 = vmatmul.mubr.msk.bf16.vlgmr.msra.gmra.mrb[0].mxu1 %vm142_vm4, %v237_v45 }
 0x3a5   :  { %1045 = vmatpush3.bf16.msra.mxu1 %v1423_v8  ;;  %1050 = vmatprep.mubr.msk.bf16.mxu1 %vm1314_vm2, %v1312_v2 }
 0x3a6   :  { %1046 = vmatprep.subr.bf16.mxu1 %v1312_v2 }
 0x3a9   :  { %1047 = vmatpush3.bf16.msra.mxu1 %v1427_v12 }
 0x3aa   :  { %1048 = vmatprep.subr.bf16.mxu1 %v1312_v2 }
 0x3ad   :  { %1049 = vmatpush3.bf16.msra.mxu1 %v1440_v16 }
 0x3ae   :  { %1064 = vmatprep.subr.bf16.mxu1 %v1312_v2 }
 0x477   :  { %v275_v46 = vpop.f32.mrb[0].mxu1 }
 0x478   :  { %v276_v47 = vadd.f32 %v1461_v20, %v275_v46  ;;  %v1032_v48 = vpop.f32.mrb[1].mxu1 }
 0x479   :  { %v278_v49 = vpop.f32.mrb[2].mxu1 }
 0x47a   :  { %1130 = vtanh.f32 %v276_v47  ;;  %v1033_v50 = vpop.f32.mrb[3].mxu1  ;;  %v962_v52 = vmul.f32 -1.442695, %v276_v47 }
 0x47b   :  { %v488_v50 = vld [vmem:[#allocation6 + $0x4] sm:$0x1] }
 0x47c   :  { %1132 = vpow2.f32 %v962_v52 }
 0x484   :  { %v1131_v51 = vpop.eup %1130 }
 0x485   :  { %290 = vrot.lane.b32.xlu0 %v1131_v51, %s1305_s29 }
 0x486   :  { %v1133_v53 = vpop.eup %1132 }
 0x487   :  { %v284_v54 = vadd.f32 1.0, %v1133_v53 }
 0x489   :  { %1134 = vrcp.f32 %v284_v54 }
 0x493   :  { %v1135_v55 = vpop.eup %1134 }
 0x494   :  { %v288_v58 = vmul.f32 %v1135_v55, %v207_v36 }
 0x4f7   :  { %v291_v56 = vpop.permute.xlu0 %290 }
 0x4f8   :  { %v293_v57 = vmul.f32 %v1135_v55, %v291_v56 }
 0x4fa   :  { %295 = vrot.lane.b32.xlu1 %v293_v57, %s1315_s3 }
 0x56c   :  { %v296_v59 = vpop.permute.xlu1 %295 }
 0x56d   :  { %v298_v60 = vadd.f32 %v296_v59, %v288_v58  ;;  %v579_v58 = vld [vmem:[#allocation6 + $0x5] sm:$0x1] }
 0x56f   :  { %1136 = vtanh.f32 %v298_v60 }
 0x579   :  { %v1137_v61 = vpop.eup %1136 }
 0x57a   :  { %301 = vrot.lane.b32.xlu0 %v1137_v61, %s1305_s29 }
 0x5ec   :  { %v302_v62 = vpop.permute.xlu0 %301 }
 0x5ed   :  { %v304_v63 = vmul.f32 %v1135_v55, %v302_v62 }
 0x5ef   :  { %v308_v0 = vpack.c.bf16 %v304_v63, %v304_v63 }
 0x5f1   :  { %v316_v1 = vrot.slane %v308_v0, %v1421_v7 }
 0x5f3   :  { %v323_v3 = vrot.slane %v316_v1, %v1421_v7 }
 0x5f5   :  { %324 = vrot.lane.b32.xlu1 %v323_v3, %s1316_s30 }
 0x667   :  { %v325_v4 = vpop.permute.xlu1 %324 }
 0x668   :  { %327 = vst.msk [vmem:[#allocation4] sm:$0x1] %vm121_vm3, %v325_v4 }
 0x66f   :  { %v328_v6 = vld [vmem:[#allocation4] sm:$0x1] }
 0x670   :  { %398 = vst.msk [vmem:[#allocation4] sm:$0x1] %vm100_vm1, %v397_v5  ;;  %1041 = vmatmul.mubr.msk.bf16.vlgmr.msra.gmra.mrb[4].mxu0 %vm142_vm4, %v328_v6 }
 0x671   :  { %1055 = vmatpush3.bf16.msra.mxu0 %v1423_v8  ;;  %1060 = vmatprep.mubr.msk.bf16.mxu0 %vm1314_vm2, %v1312_v2 }
 0x672   :  { %1056 = vmatprep.subr.bf16.mxu0 %v1312_v2 }
 0x675   :  { %1057 = vmatpush3.bf16.msra.mxu0 %v1427_v12 }
 0x676   :  { %1058 = vmatprep.subr.bf16.mxu0 %v1312_v2 }
 0x679   :  { %1059 = vmatpush3.bf16.msra.mxu0 %v1440_v16 }
 0x67a   :  { %1074 = vmatprep.subr.bf16.mxu0 %v1312_v2 }
 0x743   :  { %v366_v9 = vpop.f32.mrb[4].mxu0 }
 0x744   :  { %v367_v10 = vadd.f32 %v1461_v20, %v366_v9  ;;  %v1042_v11 = vpop.f32.mrb[5].mxu0 }
 0x745   :  { %v369_v13 = vpop.f32.mrb[6].mxu0 }
 0x746   :  { %1138 = vtanh.f32 %v367_v10  ;;  %v1043_v14 = vpop.f32.mrb[7].mxu0  ;;  %v964_v17 = vmul.f32 -1.442695, %v367_v10 }
 0x748   :  { %1140 = vpow2.f32 %v964_v17 }
 0x750   :  { %v1139_v15 = vpop.eup %1138 }
 0x751   :  { %381 = vrot.lane.b32.xlu0 %v1139_v15, %s1305_s29 }
 0x752   :  { %v1141_v18 = vpop.eup %1140 }
 0x753   :  { %v375_v19 = vadd.f32 1.0, %v1141_v18 }
 0x755   :  { %1142 = vrcp.f32 %v375_v19 }
 0x75f   :  { %v1143_v21 = vpop.eup %1142 }
 0x760   :  { %v379_v24 = vmul.f32 %v1143_v21, %v298_v60 }
 0x7c3   :  { %v382_v22 = vpop.permute.xlu0 %381 }
 0x7c4   :  { %v384_v23 = vmul.f32 %v1143_v21, %v382_v22 }
 0x7c6   :  { %386 = vrot.lane.b32.xlu1 %v384_v23, %s1315_s3 }
 0x838   :  { %v387_v25 = vpop.permute.xlu1 %386 }
 0x839   :  { %v389_v26 = vadd.f32 %v387_v25, %v379_v24  ;;  %v670_v24 = vld [vmem:[#allocation6 + $0x6] sm:$0x1] }
 0x83b   :  { %1144 = vtanh.f32 %v389_v26 }
 0x845   :  { %v1145_v27 = vpop.eup %1144 }
 0x846   :  { %392 = vrot.lane.b32.xlu0 %v1145_v27, %s1305_s29 }
 0x8b8   :  { %v393_v28 = vpop.permute.xlu0 %392 }
 0x8b9   :  { %v395_v29 = vmul.f32 %v1143_v21, %v393_v28 }
 0x8bb   :  { %v399_v30 = vpack.c.bf16 %v395_v29, %v395_v29 }
 0x8bd   :  { %v407_v31 = vrot.slane %v399_v30, %v1421_v7 }
 0x8bf   :  { %v414_v32 = vrot.slane %v407_v31, %v1421_v7 }
 0x8c1   :  { %415 = vrot.lane.b32.xlu1 %v414_v32, %s1316_s30 }
 0x933   :  { %v416_v33 = vpop.permute.xlu1 %415 }
 0x934   :  { %418 = vst.msk [vmem:[#allocation4] sm:$0x1] %vm121_vm3, %v416_v33 }
 0x93b   :  { %v419_v34 = vld [vmem:[#allocation4] sm:$0x1] }
 0x93c   :  { %1051 = vmatmul.mubr.msk.bf16.vlgmr.msra.gmra.mrb[4].mxu1 %vm142_vm4, %v419_v34  ;;  %489 = vst.msk [vmem:[#allocation4] sm:$0x1] %vm100_vm1, %v488_v50 }
 0x93d   :  { %1065 = vmatpush3.bf16.msra.mxu1 %v1423_v8  ;;  %1070 = vmatprep.mubr.msk.bf16.mxu1 %vm1314_vm2, %v1312_v2 }
 0x93e   :  { %1066 = vmatprep.subr.bf16.mxu1 %v1312_v2 }
 0x941   :  { %1067 = vmatpush3.bf16.msra.mxu1 %v1427_v12 }
 0x942   :  { %1068 = vmatprep.subr.bf16.mxu1 %v1312_v2 }
 0x945   :  { %1069 = vmatpush3.bf16.msra.mxu1 %v1440_v16 }
 0x946   :  { %1084 = vmatprep.subr.bf16.mxu1 %v1312_v2 }
 0xa0f   :  { %v457_v35 = vpop.f32.mrb[4].mxu1 }
 0xa10   :  { %v458_v36 = vadd.f32 %v1461_v20, %v457_v35  ;;  %v1052_v37 = vpop.f32.mrb[5].mxu1 }
 0xa11   :  { %v460_v38 = vpop.f32.mrb[6].mxu1 }
 0xa12   :  { %1146 = vtanh.f32 %v458_v36  ;;  %v1053_v39 = vpop.f32.mrb[7].mxu1  ;;  %v966_v41 = vmul.f32 -1.442695, %v458_v36 }
 0xa14   :  { %1148 = vpow2.f32 %v966_v41 }
 0xa1c   :  { %v1147_v40 = vpop.eup %1146 }
 0xa1d   :  { %472 = vrot.lane.b32.xlu0 %v1147_v40, %s1305_s29 }
 0xa1e   :  { %v1149_v42 = vpop.eup %1148 }
 0xa1f   :  { %v466_v43 = vadd.f32 1.0, %v1149_v42 }
 0xa21   :  { %1150 = vrcp.f32 %v466_v43 }
 0xa2b   :  { %v1151_v44 = vpop.eup %1150 }
 0xa2c   :  { %v470_v47 = vmul.f32 %v1151_v44, %v389_v26 }
 0xa8f   :  { %v473_v45 = vpop.permute.xlu0 %472 }
 0xa90   :  { %v475_v46 = vmul.f32 %v1151_v44, %v473_v45  ;;  %v761_v45 = vld [vmem:[#allocation6 + $0x7] sm:$0x1] }
 0xa92   :  { %477 = vrot.lane.b32.xlu1 %v475_v46, %s1315_s3 }
 0xb04   :  { %v478_v48 = vpop.permute.xlu1 %477 }
 0xb05   :  { %v480_v49 = vadd.f32 %v478_v48, %v470_v47 }
 0xb07   :  { %1152 = vtanh.f32 %v480_v49 }
 0xb11   :  { %v1153_v51 = vpop.eup %1152 }
 0xb12   :  { %483 = vrot.lane.b32.xlu0 %v1153_v51, %s1305_s29 }
 0xb84   :  { %v484_v52 = vpop.permute.xlu0 %483 }
 0xb85   :  { %v486_v53 = vmul.f32 %v1151_v44, %v484_v52 }
 0xb87   :  { %v490_v54 = vpack.c.bf16 %v486_v53, %v486_v53 }
 0xb89   :  { %v498_v55 = vrot.slane %v490_v54, %v1421_v7 }
 0xb8b   :  { %v505_v56 = vrot.slane %v498_v55, %v1421_v7 }
 0xb8d   :  { %506 = vrot.lane.b32.xlu1 %v505_v56, %s1316_s30 }
 0xbff   :  { %v507_v57 = vpop.permute.xlu1 %506 }
 0xc00   :  { %509 = vst.msk [vmem:[#allocation4] sm:$0x1] %vm121_vm3, %v507_v57 }
 0xc07   :  { %v510_v59 = vld [vmem:[#allocation4] sm:$0x1] }
 0xc08   :  { %1061 = vmatmul.mubr.msk.bf16.vlgmr.msra.gmra.mrb[8].mxu0 %vm142_vm4, %v510_v59  ;;  %580 = vst.msk [vmem:[#allocation4] sm:$0x1] %vm100_vm1, %v579_v58 }
 0xc09   :  { %1075 = vmatpush3.bf16.msra.mxu0 %v1423_v8  ;;  %1080 = vmatprep.mubr.msk.bf16.mxu0 %vm1314_vm2, %v1312_v2 }
 0xc0a   :  { %1076 = vmatprep.subr.bf16.mxu0 %v1312_v2 }
 0xc0d   :  { %1077 = vmatpush3.bf16.msra.mxu0 %v1427_v12 }
 0xc0e   :  { %1078 = vmatprep.subr.bf16.mxu0 %v1312_v2 }
 0xc11   :  { %1079 = vmatpush3.bf16.msra.mxu0 %v1440_v16 }
 0xc12   :  { %1094 = vmatprep.subr.bf16.mxu0 %v1312_v2 }
 0xcdb   :  { %v548_v60 = vpop.f32.mrb[8].mxu0 }
 0xcdc   :  { %v549_v61 = vadd.f32 %v1461_v20, %v548_v60  ;;  %v1062_v62 = vpop.f32.mrb[9].mxu0 }
 0xcdd   :  { %v551_v63 = vpop.f32.mrb[10].mxu0 }
 0xcde   :  { %1154 = vtanh.f32 %v549_v61  ;;  %v1063_v0 = vpop.f32.mrb[11].mxu0  ;;  %v968_v3 = vmul.f32 -1.442695, %v549_v61 }
 0xce0   :  { %1156 = vpow2.f32 %v968_v3 }
 0xce8   :  { %v1155_v1 = vpop.eup %1154 }
 0xce9   :  { %563 = vrot.lane.b32.xlu0 %v1155_v1, %s1305_s29 }
 0xcea   :  { %v1157_v4 = vpop.eup %1156 }
 0xceb   :  { %v557_v5 = vadd.f32 1.0, %v1157_v4 }
 0xced   :  { %1158 = vrcp.f32 %v557_v5 }
 0xcf7   :  { %v1159_v6 = vpop.eup %1158 }
 0xcf8   :  { %v561_v11 = vmul.f32 %v1159_v6, %v480_v49 }
 0xd5b   :  { %v564_v9 = vpop.permute.xlu0 %563 }
 0xd5c   :  { %v566_v10 = vmul.f32 %v1159_v6, %v564_v9 }
 0xd5e   :  { %568 = vrot.lane.b32.xlu1 %v566_v10, %s1315_s3 }
 0xdd0   :  { %v569_v13 = vpop.permute.xlu1 %568 }
 0xdd1   :  { %v571_v14 = vadd.f32 %v569_v13, %v561_v11 }
 0xdd3   :  { %1160 = vtanh.f32 %v571_v14 }
 0xddd   :  { %v1161_v15 = vpop.eup %1160 }
 0xdde   :  { %574 = vrot.lane.b32.xlu0 %v1161_v15, %s1305_s29 }
 0xe50   :  { %v575_v17 = vpop.permute.xlu0 %574 }
 0xe51   :  { %v577_v18 = vmul.f32 %v1159_v6, %v575_v17 }
 0xe53   :  { %v581_v19 = vpack.c.bf16 %v577_v18, %v577_v18 }
 0xe55   :  { %v589_v21 = vrot.slane %v581_v19, %v1421_v7 }
 0xe57   :  { %v596_v22 = vrot.slane %v589_v21, %v1421_v7 }
 0xe59   :  { %597 = vrot.lane.b32.xlu1 %v596_v22, %s1316_s30 }
 0xecb   :  { %v598_v23 = vpop.permute.xlu1 %597 }
 0xecc   :  { %600 = vst.msk [vmem:[#allocation4] sm:$0x1] %vm121_vm3, %v598_v23 }
 0xed3   :  { %v601_v25 = vld [vmem:[#allocation4] sm:$0x1] }
 0xed4   :  { %1071 = vmatmul.mubr.msk.bf16.vlgmr.msra.gmra.mrb[8].mxu1 %vm142_vm4, %v601_v25  ;;  %671 = vst.msk [vmem:[#allocation4] sm:$0x1] %vm100_vm1, %v670_v24  ;;  %v1120_v25 = vld [vmem:[#allocation12] sm:$0xff]  }
 0xed5   :  { %1085 = vmatpush3.bf16.msra.mxu1 %v1423_v8  ;;  %1090 = vmatprep.mubr.msk.bf16.mxu1 %vm1314_vm2, %v1312_v2 }
 0xed6   :  { %1086 = vmatprep.subr.bf16.mxu1 %v1312_v2 }
 0xed9   :  { %1087 = vmatpush3.bf16.msra.mxu1 %v1427_v12 }
 0xeda   :  { %1088 = vmatprep.subr.bf16.mxu1 %v1312_v2 }
 0xedd   :  { %1089 = vmatpush3.bf16.msra.mxu1 %v1440_v16 }
 0xfa7   :  { %v639_v26 = vpop.f32.mrb[8].mxu1 }
 0xfa8   :  { %v640_v27 = vadd.f32 %v1461_v20, %v639_v26  ;;  %v1072_v28 = vpop.f32.mrb[9].mxu1  ;;  %v1121_v26 = vld [vmem:[#allocation12 + $0x8] sm:$0xff]  }
 0xfa9   :  { %v642_v29 = vpop.f32.mrb[10].mxu1 }
 0xfaa   :  { %1162 = vtanh.f32 %v640_v27  ;;  %v1073_v30 = vpop.f32.mrb[11].mxu1  ;;  %v970_v8 = vmul.f32 -1.442695, %v640_v27 }
 0xfac   :  { %1164 = vpow2.f32 %v970_v8 }
 0xfb4   :  { %v1163_v31 = vpop.eup %1162 }
 0xfb5   :  { %654 = vrot.lane.b32.xlu0 %v1163_v31, %s1305_s29 }
 0xfb6   :  { %v1165_v32 = vpop.eup %1164 }
 0xfb7   :  { %v648_v33 = vadd.f32 1.0, %v1165_v32  ;;  %v975_v32 = vld [vmem:[#allocation5] ss:$0 sm:$0xff] }
 0xfb9   :  { %1166 = vrcp.f32 %v648_v33 }
 0xfc3   :  { %v1167_v12 = vpop.eup %1166 }
 0xfc4   :  { %v652_v16 = vmul.f32 %v1167_v12, %v571_v14 }
0x1027   :  { %v655_v34 = vpop.permute.xlu0 %654 }
0x1028   :  { %v657_v35 = vmul.f32 %v1167_v12, %v655_v34 }
0x102a   :  { %659 = vrot.lane.b32.xlu1 %v657_v35, %s1315_s3 }
0x109c   :  { %v660_v36 = vpop.permute.xlu1 %659 }
0x109d   :  { %v662_v37 = vadd.f32 %v660_v36, %v652_v16 }
0x109f   :  { %1168 = vtanh.f32 %v662_v37 }
0x10a9   :  { %v1169_v38 = vpop.eup %1168 }
0x10aa   :  { %665 = vrot.lane.b32.xlu0 %v1169_v38, %s1305_s29 }
0x111c   :  { %v666_v39 = vpop.permute.xlu0 %665 }
0x111d   :  { %v668_v40 = vmul.f32 %v1167_v12, %v666_v39 }
0x111f   :  { %v672_v41 = vpack.c.bf16 %v668_v40, %v668_v40 }
0x1121   :  { %v680_v42 = vrot.slane %v672_v41, %v1421_v7 }
0x1123   :  { %v687_v43 = vrot.slane %v680_v42, %v1421_v7 }
0x1125   :  { %688 = vrot.lane.b32.xlu1 %v687_v43, %s1316_s30 }
0x1197   :  { %v689_v44 = vpop.permute.xlu1 %688 }
0x1198   :  { %691 = vst.msk [vmem:[#allocation4] sm:$0x1] %vm121_vm3, %v689_v44 }
0x119f   :  { %v692_v46 = vld [vmem:[#allocation4] sm:$0x1] }
0x11a0   :  { %1081 = vmatmul.mubr.msk.bf16.vlgmr.msra.gmra.mrb[12].mxu0 %vm142_vm4, %v692_v46  ;;  %762 = vst.msk [vmem:[#allocation4] sm:$0x1] %vm100_vm1, %v761_v45 }
0x11a1   :  { %1098 = vmatprep.mubr.msk.bf16.mxu0 %vm1314_vm2, %v1312_v2  ;;  %1095 = vmatpush3.bf16.msra.mxu0 %v1120_v25 }
0x11a2   :  { %1096 = vmatprep.subr.bf16.mxu0 %v1312_v2 }
0x11a5   :  { %1097 = vmatpush3.bf16.msra.mxu0 %v1121_v26 }
0x1273   :  { %v730_v47 = vpop.f32.mrb[12].mxu0 }
0x1274   :  { %v731_v48 = vadd.f32 %v1461_v20, %v730_v47  ;;  %v1082_v49 = vpop.f32.mrb[13].mxu0 }
0x1275   :  { %v733_v50 = vpop.f32.mrb[14].mxu0 }
0x1276   :  { %1170 = vtanh.f32 %v731_v48  ;;  %v1083_v51 = vpop.f32.mrb[15].mxu0  ;;  %v972_v53 = vmul.f32 -1.442695, %v731_v48 }
0x1278   :  { %1172 = vpow2.f32 %v972_v53 }
0x1280   :  { %v1171_v52 = vpop.eup %1170 }
0x1281   :  { %745 = vrot.lane.b32.xlu0 %v1171_v52, %s1305_s29 }
0x1282   :  { %v1173_v54 = vpop.eup %1172 }
0x1283   :  { %v739_v55 = vadd.f32 1.0, %v1173_v54 }
0x1285   :  { %1174 = vrcp.f32 %v739_v55 }
0x128f   :  { %v1175_v56 = vpop.eup %1174 }
0x1290   :  { %v743_v59 = vmul.f32 %v1175_v56, %v662_v37 }
0x12f3   :  { %v746_v57 = vpop.permute.xlu0 %745 }
0x12f4   :  { %v748_v58 = vmul.f32 %v1175_v56, %v746_v57 }
0x12f6   :  { %750 = vrot.lane.b32.xlu1 %v748_v58, %s1315_s3 }
0x1368   :  { %v751_v60 = vpop.permute.xlu1 %750 }
0x1369   :  { %v753_v61 = vadd.f32 %v751_v60, %v743_v59 }
0x136b   :  { %1176 = vtanh.f32 %v753_v61 }
0x1375   :  { %v1177_v62 = vpop.eup %1176 }
0x1376   :  { %756 = vrot.lane.b32.xlu0 %v1177_v62, %s1305_s29 }
0x13e8   :  { %v757_v63 = vpop.permute.xlu0 %756 }
0x13e9   :  { %v759_v0 = vmul.f32 %v1175_v56, %v757_v63 }
0x13eb   :  { %v763_v1 = vpack.c.bf16 %v759_v0, %v759_v0 }
0x13ed   :  { %v771_v3 = vrot.slane %v763_v1, %v1421_v7 }
0x13ef   :  { %v778_v4 = vrot.slane %v771_v3, %v1421_v7 }
0x13f1   :  { %779 = vrot.lane.b32.xlu1 %v778_v4, %s1316_s30 }
0x1463   :  { %v780_v5 = vpop.permute.xlu1 %779 }
0x1464   :  { %782 = vst.msk [vmem:[#allocation4] sm:$0x1] %vm121_vm3, %v780_v5 }
0x146b   :  { %v783_v6 = vld [vmem:[#allocation4] sm:$0x1] }
0x146c   :  { %1091 = vmatmul.mubr.msk.bf16.vlgmr.msra.gmra.mrb[12].mxu1 %vm142_vm4, %v783_v6 }
0x153f   :  { %v821_v9 = vpop.f32.mrb[12].mxu1 }
0x1540   :  { %v822_v10 = vadd.f32 %v1461_v20, %v821_v9  ;;  %v1092_v11 = vpop.f32.mrb[13].mxu1 }
0x1541   :  { %v824_v13 = vpop.f32.mrb[14].mxu1 }
0x1542   :  { %1178 = vtanh.f32 %v822_v10  ;;  %v1093_v14 = vpop.f32.mrb[15].mxu1  ;;  %v974_v17 = vmul.f32 -1.442695, %v822_v10 }
0x1544   :  { %1180 = vpow2.f32 %v974_v17 }
0x154c   :  { %v1179_v15 = vpop.eup %1178 }
0x154d   :  { %836 = vrot.lane.b32.xlu0 %v1179_v15, %s1305_s29 }
0x154e   :  { %v1181_v7 = vpop.eup %1180 }
0x154f   :  { %v830_v18 = vadd.f32 1.0, %v1181_v7 }
0x1551   :  { %1182 = vrcp.f32 %v830_v18 }
0x155b   :  { %v1183_v19 = vpop.eup %1182 }
0x155c   :  { %v834_v23 = vmul.f32 %v1183_v19, %v753_v61 }
0x15bf   :  { %v837_v21 = vpop.permute.xlu0 %836 }
0x15c0   :  { %v839_v22 = vmul.f32 %v1183_v19, %v837_v21 }
0x15c2   :  { %841 = vrot.lane.b32.xlu1 %v839_v22, %s1315_s3 }
0x1634   :  { %v842_v24 = vpop.permute.xlu1 %841 }
0x1635   :  { %v844_v20 = vadd.f32 %v842_v24, %v834_v23 }
0x1637   :  { %1184 = vtanh.f32 %v844_v20 }
0x1641   :  { %v1185_v27 = vpop.eup %1184 }
0x1642   :  { %847 = vrot.lane.b32.xlu0 %v1185_v27, %s1305_s29  ;;  %s1318_s29 = smov [#allocation14]  }
0x1643   :  { %s944_s20 = sshll.u32 %s1318_s29, 4  ;;  %s945_s20 = int_to_ptr.vmem [resolvable:$true] %s944_s20 }
0x1644   :  { %s1274_s21 = scalar_lea.vmem %s945_s20, 32  ;;  %p1279_p5 = scmp.lt.s32.totalorder %s945_s20, %s945_s20 }
0x1645   :  { %p1275_p4 = scmp.ne.s32.totalorder %s945_s20, %s1274_s21  ;;  %p1280_p6 = scmp.lt.s32.totalorder %s1274_s21, %s1274_s21 }
0x1647   :  { %p1281_p7 = por %p1280_p6, %p1279_p5 }
0x1649   :  { %p1282_p8 = pnand %p1281_p7, %p1275_p4 }
0x16b4   :  { %v848_v28 = vpop.permute.xlu0 %847 }
0x16b5   :  { %v850_v29 = vmul.f32 %v1183_v19, %v848_v28 }
0x16b7   :  { %v865_v30 = vpack.c.bf16 %v850_v29, %v850_v29  ;;  %852 = vrot.lane.b32.xlu0 %v850_v29, %s1315_s3 }
0x16b9   :  { %878 = vrot.lane.b32.xlu1 %v865_v30, %s1315_s3 }
0x16bd   :  { %858 = vrot.lane.b32.xlu1 %v844_v20, %s1317_s1 }
0x1729   :  { %v853_v31 = vpop.permute.xlu0 %852 }
0x172a   :  { %856 = vst.msk [vmem:[#allocation2] sm:$0x3] %vm81_vm0, %v853_v31 }
0x172b   :  { %v879_v8 = vpop.permute.xlu1 %878 }
0x172c   :  { %1099 = vmatmul.mubr.msk.bf16.vlgmr.msra.gmra.mrb[16].mxu0 %vm892_vm5, %v879_v8 }
0x172f   :  { %v859_v2 = vpop.permute.xlu1 %858 }
0x1730   :  { %861 = vst.msk [vmem:[#allocation3] sm:$0x3] %vm81_vm0, %v859_v2 }
0x17ff   :  { %v930_v33 = vpop.f32.mrb[16].mxu0 }
0x1800   :  { %v931_v12 = vadd.f32 %v975_v32, %v930_v33  ;;  %v1100_v34 = vpop.f32.mrb[17].mxu0 }
0x1801   :  { %v933_v35 = vpop.f32.mrb[18].mxu0 }
0x1802   :  { %v1101_v16 = vpop.f32.mrb[19].mxu0  ;;  %937 = vst.msk [vmem:[#allocation14] sm:$0x3] %vm936_vm6, %v931_v12 }
0x1803   :  { %1285 = shalt.err (!%p1282_p8)
}
0x1804   :  { %s1286_s24 = scalar_lea.hbm %s1599_s5, 32 }
0x1805   :  { %p1287_p9 = scmp.ne.s32.totalorder %s1599_s5, %s1286_s24  ;;  %p1290_p10 = scmp.lt.u32.totalorder %s1286_s24, %s1599_s5 }
0x1807   :  { %p1292_p11 = pnand %p1290_p10, %p1287_p9 }
0x1809   :  { %1295 = shalt.err (!%p1292_p11)
}
0x180a   :  { %947 = dma.vmem_to_hbm [thread:$0]  %s945_s20, 32, %s1599_s5, [#allocation8]  }
0x180b   :  { %1302 = dma.done.wait [#allocation8], 32  }
0x180c   :  { %1303 = vsyncadd [#allocation8], 4294967264 }
0x180d   :  { %951 = vsyncpa [#allocation7], 1 }
0x180e   :  { %952 = vsyncpa [#allocation10], 1 }
0x180f   :  { %953 = vsyncpa [#allocation13], 1 }
0x1810   :  { %954 = vsyncpa [#allocation8], 1 }

</bundles_post_ra>
